<compile_context>
chip_gen: v6e
topology: v6e:2x2x1
jax: 0.10.0
libtpu: 0.0.40
codegen_flags: <defaults>
</compile_context>

<pallas_src>
import jax
import jax.numpy as jnp
from jax.experimental import pallas as pl
from jax.experimental.pallas import tpu as pltpu

# TODO(synk): MAX_ISN_SIZE / RELATION_COUNT come from identify_x86_data which is
# unavailable here; values assumed (x86 instructions are <= 15 bytes).
VOCAB_SIZE = 502
MAX_ISN_SIZE = 16
RELATION_COUNT = 4

SIZE_EMBED = 4
CODE_EMBED = 32
DIMS = [SIZE_EMBED + CODE_EMBED, 24, 16, 8, 4]     # RGCN layer in/out dims
OUT_DIM = 2
NUM_LAYERS = 4

F_PAD = 128                                        # lane-dense feature width
WEXT_ROWS = (RELATION_COUNT + 1) * F_PAD           # 640: [W_root; W_0..W_3] rows
LIN_W_OFF = NUM_LAYERS * WEXT_ROWS                 # 2560: final Linear offset
W_SLAB_ROWS = LIN_W_OFF + F_PAD                    # 2688 total slab rows


# --------------------------------------------------------------------------
# Kernel: fused 4x(RGCNConv + ReLU) + Linear for ONE graph (one grid step).
# --------------------------------------------------------------------------
def rgcn_stack_kernel(x_ref, adj_ref, w_ref, b_ref, out_ref):
    n_pad = x_ref.shape[0]

    adj = adj_ref[...]                      # (R*n_pad, n_pad)  bf16
    h = x_ref[...]                          # (n_pad, 128)      bf16

    for li in range(NUM_LAYERS):            # static unroll over layers
        base = li * WEXT_ROWS
        w_ext = w_ref[base:base + WEXT_ROWS, :]      # ((R+1)*128, 128) bf16
        bias = b_ref[li:li + 1, :]                   # (1, 128) f32

        # One stacked-relation aggregation: rows [r*n_pad:(r+1)*n_pad] = A_r @ h.
        agg = jnp.dot(adj, h, preferred_element_type=jnp.float32)
        agg = agg.astype(jnp.bfloat16)

        # [h | A_0 h | ... | A_{R-1} h]  (static sublane slices, 128-aligned
        # lane concat -> no masked/ragged layouts).
        parts = [h] + [agg[r * n_pad:(r + 1) * n_pad, :]
                       for r in range(RELATION_COUNT)]
        h_ext = jnp.concatenate(parts, axis=1)       # (n_pad, (R+1)*128) bf16

        # Root + all relation transforms + bias in a single MXU dot.
        acc = jnp.dot(h_ext, w_ext, preferred_element_type=jnp.float32) + bias
        h = jnp.maximum(acc, 0.0).astype(jnp.bfloat16)   # ReLU

    lin_w = w_ref[LIN_W_OFF:LIN_W_OFF + F_PAD, :]    # (128, 128) bf16 (padded)
    lin_b = b_ref[NUM_LAYERS:NUM_LAYERS + 1, :]      # (1, 128)   f32
    out_ref[...] = (jnp.dot(h, lin_w, preferred_element_type=jnp.float32)
                    + lin_b)                         # (n_pad, 128) f32, lane dense


# --------------------------------------------------------------------------
# Host-side glue: embeddings, adjacency, weight packing, pallas_call wrapper.
# --------------------------------------------------------------------------
def _round_up(v, m):
    return (v + m - 1) // m * m


def _build_norm_adj(edge_index, edge_type, n_pad):
    """Dense mean-normalized adjacency, shape (R*n_pad, n_pad), bf16.

    Row r*n_pad + i holds A_r[i, :] so that (A_all @ h) stacks A_r @ h blocks.
    """
    src, dst = edge_index[0], edge_index[1]
    adj = jnp.zeros((RELATION_COUNT, n_pad, n_pad), jnp.float32)
    adj = adj.at[edge_type, dst, src].add(1.0)
    deg = adj.sum(axis=-1, keepdims=True)
    adj = adj / jnp.maximum(deg, 1.0)
    # TODO(synk): for real binaries (N >> 1k) replace this dense O(R*N^2)
    # adjacency with an edge-list segment aggregation (PrefetchScalarGridSpec
    # scalar-prefetched segment offsets) and per-layer calls with a src-tile
    # reduction grid.
    return adj.reshape(RELATION_COUNT * n_pad, n_pad).astype(jnp.bfloat16)


def init_raw_params(key):
    """Parameters in their natural (PyTorch-shaped) form."""
    keys = jax.random.split(key, 16)
    p = {
        "emb_size": jax.random.normal(keys[0], (MAX_ISN_SIZE, SIZE_EMBED),
                                      jnp.float32),
        "emb_code": jax.random.normal(keys[1], (VOCAB_SIZE, CODE_EMBED),
                                      jnp.float32),
    }
    k = 2
    for li in range(NUM_LAYERS):
        fin, fout = DIMS[li], DIMS[li + 1]
        scale = 1.0 / (fin ** 0.5)
        p[f"wrel{li}"] = (jax.random.normal(
            keys[k], (RELATION_COUNT, fin, fout), jnp.float32) * scale)
        p[f"wroot{li}"] = (jax.random.normal(
            keys[k + 1], (fin, fout), jnp.float32) * scale)
        p[f"b{li}"] = jax.random.normal(keys[k + 2], (fout,), jnp.float32) * 0.1
        k += 3
    p["lin_w"] = (jax.random.normal(keys[k], (DIMS[-1], OUT_DIM), jnp.float32)
                  * (1.0 / (DIMS[-1] ** 0.5)))
    p["lin_b"] = jax.random.normal(keys[k + 1], (OUT_DIM,), jnp.float32) * 0.1
    return p


def pack_params(raw):
    """Pack all weights/biases into one bf16 slab + one f32 bias slab.

    Slab layout (rows x 128 cols, zero padded):
      [li*640 + 0        : li*640 + fin      , :fout] = W_root(li)
      [li*640 + (r+1)*128: ... + (r+1)*128+fin, :fout] = W_r(li)
      [2560 : 2564, :2] = Linear(4, 2) weight
    Bias slab row li = bias(li) (lanes 0:fout), row 4 = Linear bias (lanes 0:2).
    """
    w_slab = jnp.zeros((W_SLAB_ROWS, F_PAD), jnp.float32)
    b_slab = jnp.zeros((NUM_LAYERS + 1, F_PAD), jnp.float32)
    for li in range(NUM_LAYERS):
        fin, fout = DIMS[li], DIMS[li + 1]
        base = li * WEXT_ROWS
        w_slab = w_slab.at[base:base + fin, :fout].set(raw[f"wroot{li}"])
        for r in range(RELATION_COUNT):
            off = base + (r + 1) * F_PAD
            w_slab = w_slab.at[off:off + fin, :fout].set(raw[f"wrel{li}"][r])
        b_slab = b_slab.at[li, :fout].set(raw[f"b{li}"])
    w_slab = w_slab.at[LIN_W_OFF:LIN_W_OFF + DIMS[-1], :OUT_DIM].set(raw["lin_w"])
    b_slab = b_slab.at[NUM_LAYERS, :OUT_DIM].set(raw["lin_b"])
    return {"emb_size": raw["emb_size"], "emb_code": raw["emb_code"],
            "w_slab": w_slab.astype(jnp.bfloat16), "b_slab": b_slab}


@jax.jit
def identify_model_forward_batched(params, x_code, x_size, edge_index, edge_type):
    """Batched forward: x_code/x_size (B,N), edge_index (B,2,E), edge_type (B,E)."""
    B, N = x_code.shape
    n_pad = _round_up(max(N, 16), 16)

    # Embedding lookups + concat(dim=1), padded to lane-dense (n_pad, 128) bf16.
    e_size = jnp.take(params["emb_size"], x_size, axis=0)        # (B, N, 4)
    e_code = jnp.take(params["emb_code"], x_code, axis=0)        # (B, N, 32)
    x = jnp.concatenate([e_size, e_code], axis=-1)               # (B, N, 36)
    x = jnp.pad(x, ((0, 0), (0, n_pad - N), (0, F_PAD - x.shape[-1])))
    x = x.astype(jnp.bfloat16)

    adj = jax.vmap(lambda ei, et: _build_norm_adj(ei, et, n_pad))(
        edge_index, edge_type)                                   # (B, R*n_pad, n_pad)

    out = pl.pallas_call(
        rgcn_stack_kernel,
        out_shape=jax.ShapeDtypeStruct((B, n_pad, F_PAD), jnp.float32),
        grid=(B,),
        in_specs=[
            pl.BlockSpec((None, n_pad, F_PAD), lambda b: (b, 0, 0)),
            pl.BlockSpec((None, RELATION_COUNT * n_pad, n_pad),
                         lambda b: (b, 0, 0)),
            pl.BlockSpec((W_SLAB_ROWS, F_PAD), lambda b: (0, 0)),   # resident
            pl.BlockSpec((NUM_LAYERS + 1, F_PAD), lambda b: (0, 0)),
        ],
        out_specs=pl.BlockSpec((None, n_pad, F_PAD), lambda b: (b, 0, 0)),
        compiler_params=pltpu.CompilerParams(
            dimension_semantics=("parallel",)),
    )(x, adj, params["w_slab"], params["b_slab"])

    return out[:, :N, :OUT_DIM]


def identify_model_forward(params, x_code, x_size, edge_index, edge_type):
    """Single-graph forward matching IdentifyModel.forward: returns (N, 2)."""
    return identify_model_forward_batched(
        params, x_code[None], x_size[None], edge_index[None], edge_type[None])[0]


def reference_forward(raw, x_code, x_size, edge_index, edge_type):
    """Pure-JAX f32 reference for one graph (PyG RGCNConv mean-aggr semantics)."""
    h = jnp.concatenate([raw["emb_size"][x_size], raw["emb_code"][x_code]],
                        axis=-1)
    n = h.shape[0]
    adj = jnp.zeros((RELATION_COUNT, n, n), jnp.float32)
    adj = adj.at[edge_type, edge_index[1], edge_index[0]].add(1.0)
    adj = adj / jnp.maximum(adj.sum(-1, keepdims=True), 1.0)
    for li in range(NUM_LAYERS):
        acc = h @ raw[f"wroot{li}"] + raw[f"b{li}"]
        for r in range(RELATION_COUNT):
            acc = acc + (adj[r] @ h) @ raw[f"wrel{li}"][r]
        h = jnp.maximum(acc, 0.0)
    return h @ raw["lin_w"] + raw["lin_b"]


if __name__ == "__main__":
    key = jax.random.PRNGKey(0)
    pkey, k_code, k_size, k_src, k_dst, k_rel = jax.random.split(key, 6)

    raw = init_raw_params(pkey)
    params = pack_params(raw)

    B = 4    # graphs per launch (amortizes launch/DMA, sharded across cores)
    N = 16   # nodes per graph
    E = 32   # edges per graph

    x_code = jax.random.randint(k_code, (B, N), 0, VOCAB_SIZE, jnp.int32)
    x_size = jax.random.randint(k_size, (B, N), 0, MAX_ISN_SIZE, jnp.int32)
    src = jax.random.randint(k_src, (B, E), 0, N, jnp.int32)
    dst = jax.random.randint(k_dst, (B, E), 0, N, jnp.int32)
    edge_index = jnp.stack([src, dst], axis=1)                 # (B, 2, E)
    edge_type = jax.random.randint(k_rel, (B, E), 0, RELATION_COUNT, jnp.int32)

    out = identify_model_forward_batched(params, x_code, x_size,
                                         edge_index, edge_type)
    jax.block_until_ready(out)
    assert out.shape == (B, N, OUT_DIM) and out.dtype == jnp.float32

    # Correctness vs pure-JAX f32 reference (loose tolerance: kernel uses bf16
    # MXU operands with f32 accumulation).
    ref = jax.vmap(lambda a, b, c, d: reference_forward(raw, a, b, c, d))(
        x_code, x_size, edge_index, edge_type)
    err = float(jnp.max(jnp.abs(out - ref)))
    tol = 0.1 * float(1.0 + jnp.max(jnp.abs(ref)))
    assert err < tol, f"kernel vs reference mismatch: err={err}, tol={tol}"

    print("KERNEL_OK")
</pallas_src>

<mosaic_0001>
module attributes {stable_mosaic.version = 11 : i64} {
  func.func private @main(%arg0: i32) attributes {dimension_semantics = [#tpu.dimension_semantics<core_parallel>], iteration_bounds = array<i64: 2>, tpu.core_type = #tpu.core_type<sc_scalar_subcore>, window_params = []} {
    return
  }
}

module attributes {stable_mosaic.version = 11 : i64} {
  func.func private @main(%arg0: i32) attributes {dimension_semantics = [#tpu.dimension_semantics<core_parallel>], iteration_bounds = array<i64: 2>, tpu.core_type = #tpu.core_type<sc_scalar_subcore>, window_params = []} {
    return
  }
}

module attributes {stable_mosaic.version = 11 : i64} {
  func.func @rgcn_stack_kernel(%arg0: i32, %arg1: memref<1x16x128xbf16, #tpu.memory_space<vmem>>, %arg2: memref<1x64x16xbf16, #tpu.memory_space<vmem>>, %arg3: memref<2688x128xbf16, #tpu.memory_space<vmem>>, %arg4: memref<5x128xf32, #tpu.memory_space<vmem>>, %arg5: memref<1x16x128xf32, #tpu.memory_space<vmem>>) attributes {dimension_semantics = [#tpu.dimension_semantics<parallel>], iteration_bounds = array<i64: 4>, scalar_prefetch = 0 : i64, scratch_operands = 0 : i64, tpu.core_type = #tpu.core_type<tc>, window_params = [{transform_indices = @transform_0, window_bounds = array<i64: 1, 16, 128>}, {transform_indices = @transform_1, window_bounds = array<i64: 1, 64, 16>}, {pipeline_mode = #tpu.pipeline_mode<synchronous>, transform_indices = @transform_2, window_bounds = array<i64: 2688, 128>}, {pipeline_mode = #tpu.pipeline_mode<synchronous>, transform_indices = @transform_3, window_bounds = array<i64: 5, 128>}, {transform_indices = @transform_4, window_bounds = array<i64: 1, 16, 128>}]} {
    %c0 = arith.constant 0 : index
    %c0_0 = arith.constant 0 : index
    %c0_1 = arith.constant 0 : index
    %0 = vector.load %arg2[%c0, %c0_0, %c0_1] : memref<1x64x16xbf16, #tpu.memory_space<vmem>>, vector<1x64x16xbf16>
    %1 = vector.shape_cast %0 : vector<1x64x16xbf16> to vector<64x16xbf16>
    %c0_2 = arith.constant 0 : index
    %c0_3 = arith.constant 0 : index
    %c0_4 = arith.constant 0 : index
    %2 = vector.load %arg1[%c0_2, %c0_3, %c0_4] : memref<1x16x128xbf16, #tpu.memory_space<vmem>>, vector<1x16x128xbf16>
    %3 = vector.shape_cast %2 : vector<1x16x128xbf16> to vector<16x128xbf16>
    %c0_5 = arith.constant 0 : index
    %c0_6 = arith.constant 0 : index
    %4 = vector.load %arg3[%c0_5, %c0_6] : memref<2688x128xbf16, #tpu.memory_space<vmem>>, vector<640x128xbf16>
    %c0_7 = arith.constant 0 : index
    %c0_8 = arith.constant 0 : index
    %5 = vector.load %arg4[%c0_7, %c0_8] : memref<5x128xf32, #tpu.memory_space<vmem>>, vector<1x128xf32>
    %cst = arith.constant dense<0.000000e+00> : vector<64x128xf32>
    %6 = tpu.matmul %1, %3, %cst {dimension_numbers = #tpu.dot_dimension_numbers<[1], [0], [0], [1], [0, 0, 1, 1], [], []>} : vector<64x16xbf16>, vector<16x128xbf16>, vector<64x128xf32> -> vector<64x128xf32>
    %7 = arith.truncf %6 : vector<64x128xf32> to vector<64x128xbf16>
    %8 = vector.extract_strided_slice %7 {offsets = [0, 0], sizes = [16, 128], strides = [1, 1]} : vector<64x128xbf16> to vector<16x128xbf16>
    %9 = vector.extract_strided_slice %7 {offsets = [16, 0], sizes = [16, 128], strides = [1, 1]} : vector<64x128xbf16> to vector<16x128xbf16>
    %10 = vector.extract_strided_slice %7 {offsets = [32, 0], sizes = [16, 128], strides = [1, 1]} : vector<64x128xbf16> to vector<16x128xbf16>
    %11 = vector.extract_strided_slice %7 {offsets = [48, 0], sizes = [16, 128], strides = [1, 1]} : vector<64x128xbf16> to vector<16x128xbf16>
    %12 = tpu.concatenate %3, %8, %9, %10, %11 in 1 : vector<16x128xbf16>, vector<16x128xbf16>, vector<16x128xbf16>, vector<16x128xbf16>, vector<16x128xbf16> -> vector<16x640xbf16>
    %cst_9 = arith.constant dense<0.000000e+00> : vector<16x128xf32>
    %13 = tpu.matmul %12, %4, %cst_9 {dimension_numbers = #tpu.dot_dimension_numbers<[1], [0], [0], [1], [0, 0, 1, 1], [], []>} : vector<16x640xbf16>, vector<640x128xbf16>, vector<16x128xf32> -> vector<16x128xf32>
    %14 = vector.broadcast %5 : vector<1x128xf32> to vector<16x128xf32>
    %15 = arith.addf %13, %14 : vector<16x128xf32>
    %cst_10 = arith.constant 0.000000e+00 : f32
    %16 = vector.broadcast %cst_10 : f32 to vector<16x128xf32>
    %17 = arith.maximumf %15, %16 : vector<16x128xf32>
    %18 = arith.truncf %17 : vector<16x128xf32> to vector<16x128xbf16>
    %c640 = arith.constant 640 : index
    %c0_11 = arith.constant 0 : index
    %19 = vector.load %arg3[%c640, %c0_11] : memref<2688x128xbf16, #tpu.memory_space<vmem>>, vector<640x128xbf16>
    %c1 = arith.constant 1 : index
    %c0_12 = arith.constant 0 : index
    %20 = vector.load %arg4[%c1, %c0_12] : memref<5x128xf32, #tpu.memory_space<vmem>>, vector<1x128xf32>
    %cst_13 = arith.constant dense<0.000000e+00> : vector<64x128xf32>
    %21 = tpu.matmul %1, %18, %cst_13 {dimension_numbers = #tpu.dot_dimension_numbers<[1], [0], [0], [1], [0, 0, 1, 1], [], []>} : vector<64x16xbf16>, vector<16x128xbf16>, vector<64x128xf32> -> vector<64x128xf32>
    %22 = arith.truncf %21 : vector<64x128xf32> to vector<64x128xbf16>
    %23 = vector.extract_strided_slice %22 {offsets = [0, 0], sizes = [16, 128], strides = [1, 1]} : vector<64x128xbf16> to vector<16x128xbf16>
    %24 = vector.extract_strided_slice %22 {offsets = [16, 0], sizes = [16, 128], strides = [1, 1]} : vector<64x128xbf16> to vector<16x128xbf16>
    %25 = vector.extract_strided_slice %22 {offsets = [32, 0], sizes = [16, 128], strides = [1, 1]} : vector<64x128xbf16> to vector<16x128xbf16>
    %26 = vector.extract_strided_slice %22 {offsets = [48, 0], sizes = [16, 128], strides = [1, 1]} : vector<64x128xbf16> to vector<16x128xbf16>
    %27 = tpu.concatenate %18, %23, %24, %25, %26 in 1 : vector<16x128xbf16>, vector<16x128xbf16>, vector<16x128xbf16>, vector<16x128xbf16>, vector<16x128xbf16> -> vector<16x640xbf16>
    %cst_14 = arith.constant dense<0.000000e+00> : vector<16x128xf32>
    %28 = tpu.matmul %27, %19, %cst_14 {dimension_numbers = #tpu.dot_dimension_numbers<[1], [0], [0], [1], [0, 0, 1, 1], [], []>} : vector<16x640xbf16>, vector<640x128xbf16>, vector<16x128xf32> -> vector<16x128xf32>
    %29 = vector.broadcast %20 : vector<1x128xf32> to vector<16x128xf32>
    %30 = arith.addf %28, %29 : vector<16x128xf32>
    %cst_15 = arith.constant 0.000000e+00 : f32
    %31 = vector.broadcast %cst_15 : f32 to vector<16x128xf32>
    %32 = arith.maximumf %30, %31 : vector<16x128xf32>
    %33 = arith.truncf %32 : vector<16x128xf32> to vector<16x128xbf16>
    %c1280 = arith.constant 1280 : index
    %c0_16 = arith.constant 0 : index
    %34 = vector.load %arg3[%c1280, %c0_16] : memref<2688x128xbf16, #tpu.memory_space<vmem>>, vector<640x128xbf16>
    %c2 = arith.constant 2 : index
    %c0_17 = arith.constant 0 : index
    %35 = vector.load %arg4[%c2, %c0_17] : memref<5x128xf32, #tpu.memory_space<vmem>>, vector<1x128xf32>
    %cst_18 = arith.constant dense<0.000000e+00> : vector<64x128xf32>
    %36 = tpu.matmul %1, %33, %cst_18 {dimension_numbers = #tpu.dot_dimension_numbers<[1], [0], [0], [1], [0, 0, 1, 1], [], []>} : vector<64x16xbf16>, vector<16x128xbf16>, vector<64x128xf32> -> vector<64x128xf32>
    %37 = arith.truncf %36 : vector<64x128xf32> to vector<64x128xbf16>
    %38 = vector.extract_strided_slice %37 {offsets = [0, 0], sizes = [16, 128], strides = [1, 1]} : vector<64x128xbf16> to vector<16x128xbf16>
    %39 = vector.extract_strided_slice %37 {offsets = [16, 0], sizes = [16, 128], strides = [1, 1]} : vector<64x128xbf16> to vector<16x128xbf16>
    %40 = vector.extract_strided_slice %37 {offsets = [32, 0], sizes = [16, 128], strides = [1, 1]} : vector<64x128xbf16> to vector<16x128xbf16>
    %41 = vector.extract_strided_slice %37 {offsets = [48, 0], sizes = [16, 128], strides = [1, 1]} : vector<64x128xbf16> to vector<16x128xbf16>
    %42 = tpu.concatenate %33, %38, %39, %40, %41 in 1 : vector<16x128xbf16>, vector<16x128xbf16>, vector<16x128xbf16>, vector<16x128xbf16>, vector<16x128xbf16> -> vector<16x640xbf16>
    %cst_19 = arith.constant dense<0.000000e+00> : vector<16x128xf32>
    %43 = tpu.matmul %42, %34, %cst_19 {dimension_numbers = #tpu.dot_dimension_numbers<[1], [0], [0], [1], [0, 0, 1, 1], [], []>} : vector<16x640xbf16>, vector<640x128xbf16>, vector<16x128xf32> -> vector<16x128xf32>
    %44 = vector.broadcast %35 : vector<1x128xf32> to vector<16x128xf32>
    %45 = arith.addf %43, %44 : vector<16x128xf32>
    %cst_20 = arith.constant 0.000000e+00 : f32
    %46 = vector.broadcast %cst_20 : f32 to vector<16x128xf32>
    %47 = arith.maximumf %45, %46 : vector<16x128xf32>
    %48 = arith.truncf %47 : vector<16x128xf32> to vector<16x128xbf16>
    %c1920 = arith.constant 1920 : index
    %c0_21 = arith.constant 0 : index
    %49 = vector.load %arg3[%c1920, %c0_21] : memref<2688x128xbf16, #tpu.memory_space<vmem>>, vector<640x128xbf16>
    %c3 = arith.constant 3 : index
    %c0_22 = arith.constant 0 : index
    %50 = vector.load %arg4[%c3, %c0_22] : memref<5x128xf32, #tpu.memory_space<vmem>>, vector<1x128xf32>
    %cst_23 = arith.constant dense<0.000000e+00> : vector<64x128xf32>
    %51 = tpu.matmul %1, %48, %cst_23 {dimension_numbers = #tpu.dot_dimension_numbers<[1], [0], [0], [1], [0, 0, 1, 1], [], []>} : vector<64x16xbf16>, vector<16x128xbf16>, vector<64x128xf32> -> vector<64x128xf32>
    %52 = arith.truncf %51 : vector<64x128xf32> to vector<64x128xbf16>
    %53 = vector.extract_strided_slice %52 {offsets = [0, 0], sizes = [16, 128], strides = [1, 1]} : vector<64x128xbf16> to vector<16x128xbf16>
    %54 = vector.extract_strided_slice %52 {offsets = [16, 0], sizes = [16, 128], strides = [1, 1]} : vector<64x128xbf16> to vector<16x128xbf16>
    %55 = vector.extract_strided_slice %52 {offsets = [32, 0], sizes = [16, 128], strides = [1, 1]} : vector<64x128xbf16> to vector<16x128xbf16>
    %56 = vector.extract_strided_slice %52 {offsets = [48, 0], sizes = [16, 128], strides = [1, 1]} : vector<64x128xbf16> to vector<16x128xbf16>
    %57 = tpu.concatenate %48, %53, %54, %55, %56 in 1 : vector<16x128xbf16>, vector<16x128xbf16>, vector<16x128xbf16>, vector<16x128xbf16>, vector<16x128xbf16> -> vector<16x640xbf16>
    %cst_24 = arith.constant dense<0.000000e+00> : vector<16x128xf32>
    %58 = tpu.matmul %57, %49, %cst_24 {dimension_numbers = #tpu.dot_dimension_numbers<[1], [0], [0], [1], [0, 0, 1, 1], [], []>} : vector<16x640xbf16>, vector<640x128xbf16>, vector<16x128xf32> -> vector<16x128xf32>
    %59 = vector.broadcast %50 : vector<1x128xf32> to vector<16x128xf32>
    %60 = arith.addf %58, %59 : vector<16x128xf32>
    %cst_25 = arith.constant 0.000000e+00 : f32
    %61 = vector.broadcast %cst_25 : f32 to vector<16x128xf32>
    %62 = arith.maximumf %60, %61 : vector<16x128xf32>
    %63 = arith.truncf %62 : vector<16x128xf32> to vector<16x128xbf16>
    %c2560 = arith.constant 2560 : index
    %c0_26 = arith.constant 0 : index
    %64 = vector.load %arg3[%c2560, %c0_26] : memref<2688x128xbf16, #tpu.memory_space<vmem>>, vector<128x128xbf16>
    %c4 = arith.constant 4 : index
    %c0_27 = arith.constant 0 : index
    %65 = vector.load %arg4[%c4, %c0_27] : memref<5x128xf32, #tpu.memory_space<vmem>>, vector<1x128xf32>
    %cst_28 = arith.constant dense<0.000000e+00> : vector<16x128xf32>
    %66 = tpu.matmul %63, %64, %cst_28 {dimension_numbers = #tpu.dot_dimension_numbers<[1], [0], [0], [1], [0, 0, 1, 1], [], []>} : vector<16x128xbf16>, vector<128x128xbf16>, vector<16x128xf32> -> vector<16x128xf32>
    %67 = vector.broadcast %65 : vector<1x128xf32> to vector<16x128xf32>
    %68 = arith.addf %66, %67 : vector<16x128xf32>
    %c0_29 = arith.constant 0 : index
    %c0_30 = arith.constant 0 : index
    %c0_31 = arith.constant 0 : index
    %69 = vector.load %arg5[%c0_29, %c0_30, %c0_31] : memref<1x16x128xf32, #tpu.memory_space<vmem>>, vector<1x16x128xf32>
    %70 = vector.shape_cast %69 : vector<1x16x128xf32> to vector<16x128xf32>
    %71 = vector.shape_cast %68 : vector<16x128xf32> to vector<1x16x128xf32>
    tpu.vector_store %arg5[%c0_29, %c0_30, %c0_31], %71 {strides = array<i32>} : memref<1x16x128xf32, #tpu.memory_space<vmem>>, vector<1x16x128xf32>,
    return
  }
  func.func @transform_0(%arg0: i32) -> (i32, i32, i32) {
    %c0_i32 = arith.constant 0 : i32
    %c0_i32_0 = arith.constant 0 : i32
    %c0_i32_1 = arith.constant 0 : i32
    return %arg0, %c0_i32, %c0_i32_0 : i32, i32, i32
  }
  func.func @transform_1(%arg0: i32) -> (i32, i32, i32) {
    %c0_i32 = arith.constant 0 : i32
    %c0_i32_0 = arith.constant 0 : i32
    %c0_i32_1 = arith.constant 0 : i32
    return %arg0, %c0_i32, %c0_i32_0 : i32, i32, i32
  }
  func.func @transform_2(%arg0: i32) -> (i32, i32) {
    %c0_i32 = arith.constant 0 : i32
    %c0_i32_0 = arith.constant 0 : i32
    %c0_i32_1 = arith.constant 0 : i32
    return %c0_i32, %c0_i32_0 : i32, i32
  }
  func.func @transform_3(%arg0: i32) -> (i32, i32) {
    %c0_i32 = arith.constant 0 : i32
    %c0_i32_0 = arith.constant 0 : i32
    %c0_i32_1 = arith.constant 0 : i32
    return %c0_i32, %c0_i32_0 : i32, i32
  }
  func.func @transform_4(%arg0: i32) -> (i32, i32, i32) {
    %c0_i32 = arith.constant 0 : i32
    %c0_i32_0 = arith.constant 0 : i32
    %c0_i32_1 = arith.constant 0 : i32
    return %arg0, %c0_i32, %c0_i32_0 : i32, i32, i32
  }
}

</mosaic_0001>

<bundles_post_ra>
// kernel: identify_model_forward_batched.1
= control target key start
LH: loop header
LB: loop body
LE: loop exit
PB: predicated region body
PF: predicated region fallthrough
CT: control target
= control target key end

     0   :  { %s3340_s15 = smov 0   ;;  %s4007_s0 = inlined_call_operand.vmem [shape: bf16[4,16,128], index: 0, kind: input, shape index: {}]   ;;  %s4008_s1 = inlined_call_operand.vmem [shape: bf16[4,64,16], index: 1, kind: input, shape index: {}]   ;;  %s4009_s2 = inlined_call_operand.vmem [shape: bf16[2688,128], index: 2, kind: input, shape index: {}]   ;;  %s4010_s3 = inlined_call_operand.vmem [shape: f32[5,128], index: 3, kind: input, shape index: {}]   ;;  %s4011_s4 = inlined_call_operand.vmem [shape: f32[4,16,128], index: 4, kind: output, shape index: {}]  }
   0x1 LB: > { %s2527_s16 = sadd.s32 4294967295, %s3311_s15   ;;  %p2531_p0 = scmp.ge.s32.totalorder %s3311_s15, 1  ;;  %s3311_s15 = sphi %s3340_s15, %s14_s15  }
   0x2   : > { %p172_p1 = scmp.lt.s32.totalorder %s3311_s15, 5 }
   0x4   : > { %p173_p2 = pnand %p2531_p0, %p172_p1 }
   0x5   : > { %p203_p3 = scmp.lt.s32.totalorder (!%p173_p2), %s2527_s16, 3 }
   0x6   : > { %176 = sbr.rel (%p173_p2) target bundleno = 1979 (0x7bb), region = 36 }
   0xb   : > { %v3133_v0 = vld [vmem:[%s4009_s2 + $0x78] sm:$0xff]   ;;  %s4013_s16 = smov (!%p203_p3, %s2527_s16), 3  ;;  %v3135_v2 = vld [vmem:[%s4009_s2 + $0x70] sm:$0xff]   ;;  %v3137_v4 = vld [vmem:[%s4009_s2 + $0x68] sm:$0xff]   ;;  %vm336_vm0 = vcmask 130048   ;;  %v3313_v34 = vmov 0.0  }
   0xc   : > { %v3134_v1 = vld [vmem:[%s4009_s2 + $0x38] sm:$0xff]   ;;  %2742 = vmatprep.subr.bf16.mxu1 %v3133_v0  ;;  %s2734_s23 = sshll.u32 %s4013_s16, 3  ;;  %s2735_s24 = sshll.u32 %s4013_s16, 5  ;;  %v3136_v3 = vld [vmem:[%s4009_s2 + $0x30] sm:$0xff]   ;;  %v3138_v9 = vld [vmem:[%s4009_s2 + $0x28] sm:$0xff]   ;;  %vm3314_vm1 = vmmov 0  }
   0xd   : > { %2743 = vmatpush3.bf16.msra.mxu1 %v3134_v1  ;;  %s207_s5 = scalar_lea.vmem %s4007_s0, %s2734_s23  ;;  %s3373_s8 = scalar_lea.vmem %s4008_s1, %s2735_s24  ;;  %v3139_v10 = vld [vmem:[%s4009_s2 + $0xf8] sm:$0xff]   ;;  %v3141_v13 = vld [vmem:[%s4009_s2 + $0x60] sm:$0xff]   ;;  %v3143_v15 = vld [vmem:[%s4009_s2 + $0xf0] sm:$0xff]  }
   0xe   : > { %2744 = vmatprep.subr.bf16.mxu1 %v3135_v2  ;;  %v3375_v5 = vld [vmem:[%s207_s5] sm:$0xff]   ;;  %v3382_v7 = vld [vmem:[%s3373_s8 + $0x8] sm:$0xff]   ;;  %v3388_v8 = vld [vmem:[%s3373_s8 + $0x10] sm:$0xff]   ;;  %s2736_s17 = sshll.u32 %s4013_s16, 4 }
   0xf   : > { %v3378_v6 = vld [vmem:[%s3373_s8] sm:$0xff]   ;;  %2978 = vmatprep.subr.bf16.mxu0 %v3375_v5  ;;  %v3140_v11 = vld [vmem:[%s4009_s2 + $0xb8] sm:$0xff]   ;;  %v3144_v16 = vld [vmem:[%s4009_s2 + $0xb0] sm:$0xff]   ;;  %s217_s22 = scalar_lea.vmem %s4011_s4, %s2736_s17 }
  0x10   : > { %2979 = vmatpush3.bf16.msra.mxu0 %v3375_v5  ;;  %2980 = vmatprep.mubr.msk.bf16.mxu0 %vm336_vm0, %v3378_v6  ;;  %v3404_v12 = vld [vmem:[%s3373_s8 + $0x18] sm:$0xff]   ;;  %v3142_v14 = vld [vmem:[%s4009_s2 + $0x20] sm:$0xff]   ;;  %v3147_v19 = vld [vmem:[%s4009_s2 + $0xe8] sm:$0xff]  }
  0x11   : > { %2745 = vmatpush3.bf16.msra.mxu1 %v3136_v3  ;;  %2764 = vmatprep.subr.bf16.mxu0 %v3139_v10  ;;  %v3145_v17 = vld [vmem:[%s4009_s2 + $0x58] sm:$0xff]   ;;  %v3148_v20 = vld [vmem:[%s4009_s2 + $0xa8] sm:$0xff]   ;;  %v3149_v21 = vld [vmem:[%s4009_s2 + $0x50] sm:$0xff]  }
  0x12   : > { %2746 = vmatprep.subr.bf16.mxu1 %v3137_v4  ;;  %v3146_v18 = vld [vmem:[%s4009_s2 + $0x18] sm:$0xff]   ;;  %v3150_v22 = vld [vmem:[%s4009_s2 + $0x10] sm:$0xff]   ;;  %v3151_v23 = vld [vmem:[%s4009_s2 + $0xe0] sm:$0xff]  }
  0x13   : > { %2981 = vmatmul.mubr.msk.bf16.vlgmr.msra.gmra.mxu0 %vm336_vm0, %v3382_v7  ;;  %v3152_v24 = vld [vmem:[%s4009_s2 + $0xa0] sm:$0xff]   ;;  %v3153_v25 = vld [vmem:[%s4009_s2 + $0x48] sm:$0xff]   ;;  %v3155_v27 = vld [vmem:[%s4009_s2 + $0xd8] sm:$0xff]  }
  0x14   : > { %2984 = vmatprep.mubr.msk.bf16.mxu0 %vm336_vm0, %v3388_v8  ;;  %2765 = vmatpush3.bf16.msra.mxu0 %v3140_v11  ;;  %v3154_v26 = vld [vmem:[%s4009_s2 + $0x8] sm:$0xff]   ;;  %v3156_v28 = vld [vmem:[%s4009_s2 + $0x98] sm:$0xff]   ;;  %v3157_v29 = vld [vmem:[%s4009_s2 + $0x40] sm:$0xff]  }
  0x15   : > { %2747 = vmatpush3.bf16.msra.mxu1 %v3138_v9  ;;  %2766 = vmatprep.subr.bf16.mxu0 %v3143_v15  ;;  %v3158_v30 = vld [vmem:[%s4009_s2] sm:$0xff]   ;;  %v3159_v31 = vld [vmem:[%s4009_s2 + $0xd0] sm:$0xff]   ;;  %v3161_v33 = vld [vmem:[%s4009_s2 + $0xc8] sm:$0xff]  }
  0x16   : > { %2748 = vmatprep.subr.bf16.mxu1 %v3141_v13  ;;  %v3160_v32 = vld [vmem:[%s4009_s2 + $0x90] sm:$0xff]   ;;  %v3163_v35 = vld [vmem:[%s4009_s2 + $0x88] sm:$0xff]   ;;  %v3164_v36 = vld [vmem:[%s4009_s2 + $0xc0] sm:$0xff]  }
  0x17   : > { %v3166_v37 = vld [vmem:[%s4009_s2 + $0x80] sm:$0xff]   ;;  %v3162_v43 = vld [vmem:[%s4009_s2 + $0x138] sm:$0xff]   ;;  %v3165_v46 = vld [vmem:[%s4009_s2 + $0x130] sm:$0xff]  }
  0x18   : > { %2767 = vmatpush3.bf16.msra.mxu0 %v3144_v16  ;;  %v3167_v50 = vld [vmem:[%s4009_s2 + $0x128] sm:$0xff]   ;;  %v3168_v52 = vld [vmem:[%s4009_s2 + $0x120] sm:$0xff]   ;;  %v3169_v53 = vld [vmem:[%s4009_s2 + $0x118] sm:$0xff]  }
  0x19   : > { %2749 = vmatpush3.bf16.msra.mxu1 %v3142_v14  ;;  %2768 = vmatprep.subr.bf16.mxu0 %v3147_v19  ;;  %v3170_v54 = vld [vmem:[%s4009_s2 + $0x110] sm:$0xff]   ;;  %v3171_v55 = vld [vmem:[%s4009_s2 + $0x108] sm:$0xff]   ;;  %v3172_v56 = vld [vmem:[%s4009_s2 + $0x100] sm:$0xff]  }
  0x1a   : > { %2750 = vmatprep.subr.bf16.mxu1 %v3145_v17  ;;  %v3179_v58 = vld [vmem:[%s4009_s2 + $0x238] sm:$0xff]   ;;  %v3183_v60 = vld [vmem:[%s4009_s2 + $0x230] sm:$0xff]   ;;  %v3187_v62 = vld [vmem:[%s4009_s2 + $0x228] sm:$0xff]  }
  0x1b   : > { %2985 = vmatmul.mubr.msk.bf16.gmra.mxu0 %vm336_vm0, %v3404_v12  ;;  %v3180_v59 = vld [vmem:[%s4009_s2 + $0x1f8] sm:$0xff]   ;;  %v3184_v61 = vld [vmem:[%s4009_s2 + $0x1f0] sm:$0xff]   ;;  %v3188_v63 = vld [vmem:[%s4009_s2 + $0x1e8] sm:$0xff]  }
  0x1c   : > { %2769 = vmatpush3.bf16.msra.mxu0 %v3148_v20  ;;  %v3191_v0 = vld [vmem:[%s4009_s2 + $0x220] sm:$0xff]  }
  0x1d   : > { %2751 = vmatpush3.bf16.msra.mxu1 %v3146_v18  ;;  %2770 = vmatprep.subr.bf16.mxu0 %v3151_v23  ;;  %v3192_v1 = vld [vmem:[%s4009_s2 + $0x1e0] sm:$0xff]  }
  0x1e   : > { %2752 = vmatprep.subr.bf16.mxu1 %v3149_v21  ;;  %v2547_v13 = vld [vmem:[%s4010_s3] ss:$0 sm:$0xff] }
  0x20   : > { %2771 = vmatpush3.bf16.msra.mxu0 %v3152_v24 }
  0x21   : > { %2753 = vmatpush3.bf16.msra.mxu1 %v3150_v22  ;;  %2772 = vmatprep.subr.bf16.mxu0 %v3155_v27 }
  0x22   : > { %2754 = vmatprep.subr.bf16.mxu1 %v3153_v25 }
  0x24   : > { %2773 = vmatpush3.bf16.msra.mxu0 %v3156_v28 }
  0x25   : > { %2755 = vmatpush3.bf16.msra.mxu1 %v3154_v26  ;;  %2774 = vmatprep.subr.bf16.mxu0 %v3159_v31  ;;  %v3173_v31 = vld [vmem:[%s4009_s2 + $0x1b8] sm:$0xff]  }
  0x26   : > { %2756 = vmatprep.subr.bf16.mxu1 %v3157_v29 }
  0x28   : > { %2775 = vmatpush3.bf16.msra.mxu0 %v3160_v32  ;;  %v3174_v32 = vld [vmem:[%s4009_s2 + $0x178] sm:$0xff]  }
  0x29   : > { %2757 = vmatpush3.bf16.msra.mxu1 %v3158_v30  ;;  %2776 = vmatprep.subr.bf16.mxu0 %v3161_v33  ;;  %v3175_v33 = vld [vmem:[%s4009_s2 + $0x1b0] sm:$0xff]  }
  0x2a   : > { %2988 = vmatprep.subr.bf16.mxu1 %v3313_v34 }
  0x2c   : > { %2777 = vmatpush3.bf16.msra.mxu0 %v3163_v35  ;;  %v3176_v35 = vld [vmem:[%s4009_s2 + $0x170] sm:$0xff]  }
  0x2d   : > { %2778 = vmatprep.subr.bf16.mxu0 %v3164_v36  ;;  %v3177_v36 = vld [vmem:[%s4009_s2 + $0x1a8] sm:$0xff]  }
  0x30   : > { %2779 = vmatpush3.bf16.msra.mxu0 %v3166_v37  ;;  %v3178_v37 = vld [vmem:[%s4009_s2 + $0x168] sm:$0xff]  }
  0xd3   : > { %v2982_v38 = vpop.f32.mrf.mxu0 }
  0xd5   : > { %v383_v39 = vpop.f32.mrf.mxu0 }
  0xd7   : > { %v2983_v40 = vpop.f32.mrf.mxu0 }
  0xd8   : > { %v415_v51 = vpack.c.bf16 %v2983_v40, %v2982_v38  ;;  %v3185_v38 = vld [vmem:[%s4009_s2 + $0x198] sm:$0xff]   ;;  %v3190_v40 = vld [vmem:[%s4009_s2 + $0x150] sm:$0xff]  }
  0xd9   : > { %v386_v41 = vpop.f32.mrf.mxu0 }
  0xda   : > { %v414_v42 = vpack.c.bf16 %v386_v41, %v383_v39  ;;  %v3186_v39 = vld [vmem:[%s4009_s2 + $0x158] sm:$0xff]   ;;  %v3193_v41 = vld [vmem:[%s4009_s2 + $0x188] sm:$0xff]  }
  0xdb   : > { %v2986_v44 = vpop.f32.mrf.mxu0 }
  0xdc   : > { %694 = vmatprep.mubr.bf16.mxu1 %v414_v42  ;;  %v3194_v42 = vld [vmem:[%s4009_s2 + $0x148] sm:$0xff]  }
  0xdd   : > { %v399_v45 = vpop.f32.mrf.mxu0  ;;  %695 = vmatmul.mubr.bf16.vlgmr.msra.gmra.mxu1 %v3375_v5 }
  0xde   : > { %2989 = vmatpush3.bf16.msra.mxu1 %v3162_v43  ;;  %3004 = vmatprep.mubr.msk.bf16.mxu1 %vm3314_vm1, %v3313_v34  ;;  %v3195_v43 = vld [vmem:[%s4009_s2 + $0x218] sm:$0xff]  }
  0xdf   : > { %v2987_v47 = vpop.f32.mrf.mxu0  ;;  %2990 = vmatprep.subr.bf16.mxu1 %v3313_v34 }
  0xe0   : > { %v417_v57 = vpack.c.bf16 %v2987_v47, %v2986_v44  ;;  %v3196_v44 = vld [vmem:[%s4009_s2 + $0x1d8] sm:$0xff]   ;;  %v3199_v47 = vld [vmem:[%s4009_s2 + $0x210] sm:$0xff]  }
  0xe1   : > { %v402_v48 = vpop.f32.mrf.mxu0 }
  0xe2   : > { %v416_v49 = vpack.c.bf16 %v402_v48, %v399_v45  ;;  %2991 = vmatpush3.bf16.msra.mxu1 %v3165_v46  ;;  %v3197_v45 = vld [vmem:[%s4009_s2 + $0x180] sm:$0xff]   ;;  %v3200_v48 = vld [vmem:[%s4009_s2 + $0x1d0] sm:$0xff]  }
  0xe3   : > { %2992 = vmatprep.subr.bf16.mxu1 %v3313_v34  ;;  %v3198_v46 = vld [vmem:[%s4009_s2 + $0x140] sm:$0xff]  }
  0xe4   : > { %735 = vmatprep.mubr.bf16.mxu0 %v416_v49  ;;  %v3201_v49 = vld [vmem:[%s4009_s2 + $0x208] sm:$0xff]  }
  0xe5   : > { %736 = vmatmul.mubr.bf16.vlgmr.msra.gmra.mxu0 %v415_v51  ;;  %v3204_v51 = vld [vmem:[%s4009_s2 + $0x200] sm:$0xff]  }
  0xe6   : > { %2993 = vmatpush3.bf16.msra.mxu1 %v3167_v50  ;;  %3010 = vmatprep.mubr.msk.bf16.mxu0 %vm336_vm0, %v3378_v6  ;;  %v3203_v50 = vld [vmem:[%s4009_s2 + $0x1c8] sm:$0xff]  }
  0xe7   : > { %2994 = vmatprep.subr.bf16.mxu1 %v3313_v34 }
  0xea   : > { %2995 = vmatpush3.bf16.msra.mxu1 %v3168_v52  ;;  %v3206_v52 = vld [vmem:[%s4009_s2 + $0x1c0] sm:$0xff]  }
  0xeb   : > { %2996 = vmatprep.subr.bf16.mxu1 %v3313_v34 }
  0xee   : > { %2997 = vmatpush3.bf16.msra.mxu1 %v3169_v53 }
  0xef   : > { %2998 = vmatprep.subr.bf16.mxu1 %v3313_v34 }
  0xf2   : > { %2999 = vmatpush3.bf16.msra.mxu1 %v3170_v54 }
  0xf3   : > { %3000 = vmatprep.subr.bf16.mxu1 %v3313_v34 }
  0xf6   : > { %3001 = vmatpush3.bf16.msra.mxu1 %v3171_v55 }
  0xf7   : > { %3002 = vmatprep.subr.bf16.mxu1 %v3313_v34 }
  0xfa   : > { %3003 = vmatpush3.bf16.msra.mxu1 %v3172_v56 }
  0xfb   : > { %2822 = vmatprep.subr.bf16.mxu1 %v3179_v58  ;;  %v3202_v58 = vld [vmem:[%s4009_s2 + $0x278] sm:$0xff]  }
  0xfd   : > { %3005 = vmatmul.mubr.bf16.vlgmr.msra.gmra.mxu1 %v417_v57 }
  0xfe   : > { %2823 = vmatpush3.bf16.msra.mxu1 %v3180_v59 }
  0xff   : > { %2824 = vmatprep.subr.bf16.mxu1 %v3183_v60 }
 0x102   : > { %2825 = vmatpush3.bf16.msra.mxu1 %v3184_v61  ;;  %v3205_v61 = vld [vmem:[%s4009_s2 + $0x270] sm:$0xff]  }
 0x103   : > { %2826 = vmatprep.subr.bf16.mxu1 %v3187_v62 }
 0x106   : > { %2827 = vmatpush3.bf16.msra.mxu1 %v3188_v63 }
 0x107   : > { %2828 = vmatprep.subr.bf16.mxu1 %v3191_v0 }
 0x10a   : > { %2829 = vmatpush3.bf16.msra.mxu1 %v3192_v1  ;;  %v3207_v1 = vld [vmem:[%s4009_s2 + $0x268] sm:$0xff]  }
 0x10b   : > { %2830 = vmatprep.subr.bf16.mxu1 %v3195_v43 }
 0x10e   : > { %2831 = vmatpush3.bf16.msra.mxu1 %v3196_v44 }
 0x10f   : > { %2832 = vmatprep.subr.bf16.mxu1 %v3199_v47 }
 0x112   : > { %2833 = vmatpush3.bf16.msra.mxu1 %v3200_v48 }
 0x113   : > { %2834 = vmatprep.subr.bf16.mxu1 %v3201_v49  ;;  %v3219_v49 = vld [vmem:[%s4009_s2 + $0x378] sm:$0xff]  }
 0x116   : > { %2835 = vmatpush3.bf16.msra.mxu1 %v3203_v50  ;;  %v3220_v50 = vld [vmem:[%s4009_s2 + $0x338] sm:$0xff]  }
 0x117   : > { %2836 = vmatprep.subr.bf16.mxu1 %v3204_v51  ;;  %v3223_v51 = vld [vmem:[%s4009_s2 + $0x370] sm:$0xff]  }
 0x11a   : > { %2837 = vmatpush3.bf16.msra.mxu1 %v3206_v52  ;;  %v3715_v52 = vld [vmem:[%s3373_s8 + $0x8] sm:$0xff]  }
 0x19d   : > { %v2758_v2 = vpop.f32.mrf.mxu1 }
 0x19f   : > { %v2759_v4 = vpop.f32.mrf.mxu1 }
 0x1a0   : > { %v2760_v11 = vadd.f32 %v2759_v4, %v2758_v2  ;;  %v3209_v4 = vld [vmem:[%s4009_s2 + $0x258] sm:$0xff]  }
 0x1a1   : > { %v2761_v6 = vpop.f32.mrf.mxu1 }
 0x1a2   : > { %v697_v17 = vadd.f32 %v2760_v11, %v2547_v13  ;;  %v3662_v11 = vld [vmem:[%s3373_s8] sm:$0xff]  }
 0x1a3   : > { %v2762_v10 = vpop.f32.mrf.mxu1 }
 0x1a4   : > { %v2763_v15 = vadd.f32 %v2762_v10, %v2761_v6  ;;  %v3211_v6 = vld [vmem:[%s4009_s2 + $0x248] sm:$0xff]  }
 0x1a5   : > { %v2780_v3 = vpop.f32.mrf.mxu0 }
 0x1a6   : > { %v700_v20 = vadd.f32 %v2763_v15, %v2547_v13  ;;  %v3213_v13 = vld [vmem:[%s4009_s2 + $0x2f8] sm:$0xff]   ;;  %v3215_v15 = vld [vmem:[%s4009_s2 + $0x2f0] sm:$0xff]  }
 0x1a7   : > { %v2781_v5 = vpop.f32.mrf.mxu0  ;;  %2858 = vmatprep.subr.bf16.mxu1 %v3213_v13 }
 0x1a8   : > { %v2782_v16 = vadd.f32 %v2781_v5, %v2780_v3  ;;  %v3208_v3 = vld [vmem:[%s4009_s2 + $0x260] sm:$0xff]   ;;  %v3210_v5 = vld [vmem:[%s4009_s2 + $0x250] sm:$0xff]  }
 0x1a9   : > { %v2783_v9 = vpop.f32.mrf.mxu0 }
 0x1aa   : > { %v738_v21 = vadd.f32 %v2782_v16, %v697_v17  ;;  %v3216_v16 = vld [vmem:[%s4009_s2 + $0x2b0] sm:$0xff]   ;;  %v3217_v17 = vld [vmem:[%s4009_s2 + $0x2e8] sm:$0xff]  }
 0x1ab   : > { %v2784_v14 = vpop.f32.mrf.mxu0 }
 0x1ac   : > { %v2785_v18 = vadd.f32 %v2784_v14, %v2783_v9  ;;  %v3212_v9 = vld [vmem:[%s4009_s2 + $0x240] sm:$0xff]   ;;  %v3214_v14 = vld [vmem:[%s4009_s2 + $0x2b8] sm:$0xff]  }
 0x1ae   : > { %v741_v24 = vadd.f32 %v2785_v18, %v700_v20  ;;  %v3218_v18 = vld [vmem:[%s4009_s2 + $0x2a8] sm:$0xff]   ;;  %v3222_v20 = vld [vmem:[%s4009_s2 + $0x2a0] sm:$0xff]  }
 0x1bd   : > { %v778_v19 = vpop.f32.mrf.mxu1 }
 0x1be   : > { %v779_v23 = vadd.f32 %v778_v19, %v738_v21  ;;  %v3221_v19 = vld [vmem:[%s4009_s2 + $0x2e0] sm:$0xff]   ;;  %v3225_v21 = vld [vmem:[%s4009_s2 + $0x2d8] sm:$0xff]  }
 0x1bf   : > { %v3006_v22 = vpop.f32.mrf.mxu1 }
 0x1c0   : > { %v785_v28 = vmax.f32 %v779_v23, 0.0  ;;  %v3226_v22 = vld [vmem:[%s4009_s2 + $0x298] sm:$0xff]   ;;  %v3229_v23 = vld [vmem:[%s4009_s2 + $0x2d0] sm:$0xff]  }
 0x1c1   : > { %v781_v25 = vpop.f32.mrf.mxu1 }
 0x1c2   : > { %v782_v26 = vadd.f32 %v781_v25, %v741_v24  ;;  %v3230_v24 = vld [vmem:[%s4009_s2 + $0x290] sm:$0xff]  }
 0x1c3   : > { %v3007_v27 = vpop.f32.mrf.mxu1 }
 0x1c4   : > { %v786_v29 = vmax.f32 %v782_v26, 0.0 }
 0x1c6   : > { %v3544_v30 = vpack.c.bf16 %v786_v29, %v785_v28 }
 0x1c8   : > { %3008 = vmatprep.subr.bf16.mxu0 %v3544_v30 }
 0x1c9   : > { %3009 = vmatpush3.bf16.msra.mxu0 %v3544_v30 }
 0x1ca   : > { %2800 = vmatprep.subr.bf16.mxu0 %v3173_v31 }
 0x1cc   : > { %3011 = vmatmul.mubr.msk.bf16.vlgmr.msra.gmra.mxu0 %vm336_vm0, %v3382_v7  ;;  %v3181_v7 = vld [vmem:[%s4009_s2 + $0x1a0] sm:$0xff]  }
 0x1cd   : > { %3014 = vmatprep.mubr.msk.bf16.mxu0 %vm336_vm0, %v3388_v8  ;;  %2801 = vmatpush3.bf16.msra.mxu0 %v3174_v32  ;;  %v3182_v8 = vld [vmem:[%s4009_s2 + $0x160] sm:$0xff]  }
 0x1ce   : > { %2802 = vmatprep.subr.bf16.mxu0 %v3175_v33  ;;  %v2592_v33 = vld [vmem:[%s4010_s3 + $0x1] ss:$0 sm:$0xff] }
 0x1d1   : > { %2803 = vmatpush3.bf16.msra.mxu0 %v3176_v35 }
 0x1d2   : > { %2804 = vmatprep.subr.bf16.mxu0 %v3177_v36 }
 0x1d4   : > { %3015 = vmatmul.mubr.msk.bf16.gmra.mxu0 %vm336_vm0, %v3404_v12  ;;  %v3189_v12 = vld [vmem:[%s4009_s2 + $0x190] sm:$0xff]  }
 0x1d5   : > { %2805 = vmatpush3.bf16.msra.mxu0 %v3178_v37 }
 0x1d6   : > { %2806 = vmatprep.subr.bf16.mxu0 %v3181_v7 }
 0x1d9   : > { %2807 = vmatpush3.bf16.msra.mxu0 %v3182_v8 }
 0x1da   : > { %2808 = vmatprep.subr.bf16.mxu0 %v3185_v38 }
 0x1dd   : > { %2809 = vmatpush3.bf16.msra.mxu0 %v3186_v39 }
 0x1de   : > { %2810 = vmatprep.subr.bf16.mxu0 %v3189_v12 }
 0x1e1   : > { %2811 = vmatpush3.bf16.msra.mxu0 %v3190_v40 }
 0x1e2   : > { %2812 = vmatprep.subr.bf16.mxu0 %v3193_v41 }
 0x1e5   : > { %2813 = vmatpush3.bf16.msra.mxu0 %v3194_v42 }
 0x1e6   : > { %2814 = vmatprep.subr.bf16.mxu0 %v3197_v45 }
 0x1e9   : > { %2815 = vmatpush3.bf16.msra.mxu0 %v3198_v46 }
 0x1ea   : > { %3018 = vmatprep.subr.bf16.mxu0 %v3313_v34 }
 0x28c   : > { %v3012_v53 = vpop.f32.mrf.mxu0 }
 0x28e   : > { %v903_v54 = vpop.f32.mrf.mxu0 }
 0x290   : > { %v3013_v55 = vpop.f32.mrf.mxu0 }
 0x291   : > { %v935_v2 = vpack.c.bf16 %v3013_v55, %v3012_v53  ;;  %v3720_v53 = vld [vmem:[%s3373_s8 + $0x10] sm:$0xff]   ;;  %v3227_v55 = vld [vmem:[%s4009_s2 + $0x368] sm:$0xff]  }
 0x292   : > { %v906_v56 = vpop.f32.mrf.mxu0 }
 0x293   : > { %v934_v57 = vpack.c.bf16 %v906_v56, %v903_v54  ;;  %v3224_v54 = vld [vmem:[%s4009_s2 + $0x330] sm:$0xff]   ;;  %v3228_v56 = vld [vmem:[%s4009_s2 + $0x328] sm:$0xff]  }
 0x294   : > { %v3016_v59 = vpop.f32.mrf.mxu0 }
 0x295   : > { %1214 = vmatprep.mubr.bf16.mxu0 %v934_v57  ;;  %v3231_v57 = vld [vmem:[%s4009_s2 + $0x360] sm:$0xff]  }
 0x296   : > { %v919_v60 = vpop.f32.mrf.mxu0  ;;  %1215 = vmatmul.mubr.bf16.vlgmr.msra.gmra.mxu0 %v3544_v30 }
 0x297   : > { %3019 = vmatpush3.bf16.msra.mxu0 %v3202_v58  ;;  %3034 = vmatprep.mubr.msk.bf16.mxu0 %vm3314_vm1, %v3313_v34  ;;  %v3737_v58 = vld [vmem:[%s3373_s8 + $0x18] sm:$0xff]  }
 0x298   : > { %v3017_v62 = vpop.f32.mrf.mxu0  ;;  %3020 = vmatprep.subr.bf16.mxu0 %v3313_v34 }
 0x299   : > { %v937_v10 = vpack.c.bf16 %v3017_v62, %v3016_v59  ;;  %v3232_v59 = vld [vmem:[%s4009_s2 + $0x320] sm:$0xff]   ;;  %v3235_v62 = vld [vmem:[%s4009_s2 + $0x358] sm:$0xff]  }
 0x29a   : > { %v922_v63 = vpop.f32.mrf.mxu0 }
 0x29b   : > { %v936_v0 = vpack.c.bf16 %v922_v63, %v919_v60  ;;  %3021 = vmatpush3.bf16.msra.mxu0 %v3205_v61  ;;  %v3233_v60 = vld [vmem:[%s4009_s2 + $0x2c8] sm:$0xff]   ;;  %v3236_v63 = vld [vmem:[%s4009_s2 + $0x318] sm:$0xff]  }
 0x29c   : > { %3022 = vmatprep.subr.bf16.mxu0 %v3313_v34  ;;  %v3234_v61 = vld [vmem:[%s4009_s2 + $0x288] sm:$0xff]  }
 0x29d   : > { %1255 = vmatprep.mubr.bf16.mxu1 %v936_v0  ;;  %v3237_v0 = vld [vmem:[%s4009_s2 + $0x2c0] sm:$0xff]  }
 0x29e   : > { %1256 = vmatmul.mubr.bf16.vlgmr.msra.gmra.mxu1 %v935_v2  ;;  %v3239_v2 = vld [vmem:[%s4009_s2 + $0x350] sm:$0xff]  }
 0x29f   : > { %3023 = vmatpush3.bf16.msra.mxu0 %v3207_v1  ;;  %2859 = vmatpush3.bf16.msra.mxu1 %v3214_v14  ;;  %v3238_v1 = vld [vmem:[%s4009_s2 + $0x280] sm:$0xff]  }
 0x2a0   : > { %3024 = vmatprep.subr.bf16.mxu0 %v3313_v34  ;;  %2860 = vmatprep.subr.bf16.mxu1 %v3215_v15 }
 0x2a3   : > { %3025 = vmatpush3.bf16.msra.mxu0 %v3208_v3  ;;  %2861 = vmatpush3.bf16.msra.mxu1 %v3216_v16  ;;  %v3240_v3 = vld [vmem:[%s4009_s2 + $0x310] sm:$0xff]  }
 0x2a4   : > { %3026 = vmatprep.subr.bf16.mxu0 %v3313_v34  ;;  %2862 = vmatprep.subr.bf16.mxu1 %v3217_v17  ;;  %v3242_v17 = vld [vmem:[%s4009_s2 + $0x3b8] sm:$0xff]  }
 0x2a7   : > { %3027 = vmatpush3.bf16.msra.mxu0 %v3209_v4  ;;  %2863 = vmatpush3.bf16.msra.mxu1 %v3218_v18  ;;  %v3241_v4 = vld [vmem:[%s4009_s2 + $0x348] sm:$0xff]  }
 0x2a8   : > { %3028 = vmatprep.subr.bf16.mxu0 %v3313_v34  ;;  %2864 = vmatprep.subr.bf16.mxu1 %v3221_v19 }
 0x2ab   : > { %3029 = vmatpush3.bf16.msra.mxu0 %v3210_v5  ;;  %2865 = vmatpush3.bf16.msra.mxu1 %v3222_v20  ;;  %v3243_v5 = vld [vmem:[%s4009_s2 + $0x308] sm:$0xff]   ;;  %v3245_v20 = vld [vmem:[%s4009_s2 + $0x3b0] sm:$0xff]  }
 0x2ac   : > { %3030 = vmatprep.subr.bf16.mxu0 %v3313_v34  ;;  %2866 = vmatprep.subr.bf16.mxu1 %v3225_v21 }
 0x2af   : > { %3031 = vmatpush3.bf16.msra.mxu0 %v3211_v6  ;;  %2867 = vmatpush3.bf16.msra.mxu1 %v3226_v22  ;;  %v3244_v6 = vld [vmem:[%s4009_s2 + $0x340] sm:$0xff]  }
 0x2b0   : > { %3032 = vmatprep.subr.bf16.mxu0 %v3313_v34  ;;  %2868 = vmatprep.subr.bf16.mxu1 %v3229_v23 }
 0x2b3   : > { %3033 = vmatpush3.bf16.msra.mxu0 %v3212_v9  ;;  %2869 = vmatpush3.bf16.msra.mxu1 %v3230_v24  ;;  %v3246_v9 = vld [vmem:[%s4009_s2 + $0x300] sm:$0xff]   ;;  %v3247_v24 = vld [vmem:[%s4009_s2 + $0x3a8] sm:$0xff]  }
 0x2b4   : > { %2870 = vmatprep.subr.bf16.mxu1 %v3233_v60 }
 0x2b6   : > { %3035 = vmatmul.mubr.bf16.vlgmr.msra.gmra.mxu0 %v937_v10 }
 0x2b7   : > { %3040 = vmatprep.mubr.msk.bf16.mxu0 %vm336_vm0, %v3662_v11  ;;  %2871 = vmatpush3.bf16.msra.mxu1 %v3234_v61 }
 0x2b8   : > { %2872 = vmatprep.subr.bf16.mxu1 %v3237_v0 }
 0x2bb   : > { %2873 = vmatpush3.bf16.msra.mxu1 %v3238_v1 }
 0x2bc   : > { %3048 = vmatprep.subr.bf16.mxu1 %v3313_v34 }
 0x356   : > { %v2816_v25 = vpop.f32.mrf.mxu0 }
 0x358   : > { %v2817_v27 = vpop.f32.mrf.mxu0 }
 0x359   : > { %v2818_v32 = vadd.f32 %v2817_v27, %v2816_v25  ;;  %v3249_v27 = vld [vmem:[%s4009_s2 + $0x398] sm:$0xff]  }
 0x35a   : > { %v2819_v29 = vpop.f32.mrf.mxu0 }
 0x35b   : > { %v1217_v7 = vadd.f32 %v2818_v32, %v2592_v33  ;;  %v3260_v32 = vld [vmem:[%s4009_s2 + $0x478] sm:$0xff]  }
 0x35c   : > { %v2820_v31 = vpop.f32.mrf.mxu0 }
 0x35d   : > { %v2821_v36 = vadd.f32 %v2820_v31, %v2819_v29  ;;  %v3252_v29 = vld [vmem:[%s4009_s2 + $0x380] sm:$0xff]   ;;  %v3259_v31 = vld [vmem:[%s4009_s2 + $0x4b8] sm:$0xff]  }
 0x35e   : > { %v2838_v26 = vpop.f32.mrf.mxu1 }
 0x35f   : > { %v1220_v39 = vadd.f32 %v2821_v36, %v2592_v33  ;;  %v3263_v33 = vld [vmem:[%s4009_s2 + $0x4b0] sm:$0xff]   ;;  %v3267_v36 = vld [vmem:[%s4009_s2 + $0x4a8] sm:$0xff]  }
 0x360   : > { %v2839_v28 = vpop.f32.mrf.mxu1 }
 0x361   : > { %v2840_v37 = vadd.f32 %v2839_v28, %v2838_v26  ;;  %v3248_v26 = vld [vmem:[%s4009_s2 + $0x3a0] sm:$0xff]   ;;  %v3250_v28 = vld [vmem:[%s4009_s2 + $0x390] sm:$0xff]  }
 0x362   : > { %v2841_v30 = vpop.f32.mrf.mxu1 }
 0x363   : > { %v1258_v12 = vadd.f32 %v2840_v37, %v1217_v7  ;;  %v3268_v37 = vld [vmem:[%s4009_s2 + $0x468] sm:$0xff]   ;;  %v3271_v7 = vld [vmem:[%s4009_s2 + $0x4a0] sm:$0xff]  }
 0x364   : > { %v2842_v35 = vpop.f32.mrf.mxu1 }
 0x365   : > { %v2843_v8 = vadd.f32 %v2842_v35, %v2841_v30  ;;  %v3264_v35 = vld [vmem:[%s4009_s2 + $0x470] sm:$0xff]  }
 0x367   : > { %v1261_v42 = vadd.f32 %v2843_v8, %v1220_v39  ;;  %v3272_v8 = vld [vmem:[%s4009_s2 + $0x460] sm:$0xff]  }
 0x376   : > { %v1298_v38 = vpop.f32.mrf.mxu0 }
 0x377   : > { %v1299_v41 = vadd.f32 %v1298_v38, %v1258_v12 }
 0x378   : > { %v3036_v40 = vpop.f32.mrf.mxu0 }
 0x379   : > { %v1305_v46 = vmax.f32 %v1299_v41, 0.0 }
 0x37a   : > { %v1301_v43 = vpop.f32.mrf.mxu0 }
 0x37b   : > { %v1302_v44 = vadd.f32 %v1301_v43, %v1261_v42 }
 0x37c   : > { %v3037_v45 = vpop.f32.mrf.mxu0 }
 0x37d   : > { %v1306_v47 = vmax.f32 %v1302_v44, 0.0  ;;  %v2637_v45 = vld [vmem:[%s4010_s3 + $0x2] ss:$0 sm:$0xff] }
 0x37f   : > { %v1307_v48 = vpack.c.bf16 %v1306_v47, %v1305_v46 }
 0x381   : > { %3038 = vmatprep.subr.bf16.mxu0 %v1307_v48 }
 0x382   : > { %3039 = vmatpush3.bf16.msra.mxu0 %v1307_v48 }
 0x383   : > { %2880 = vmatprep.subr.bf16.mxu0 %v3219_v49 }
 0x385   : > { %3041 = vmatmul.mubr.msk.bf16.vlgmr.msra.gmra.mxu0 %vm336_vm0, %v3715_v52 }
 0x386   : > { %3044 = vmatprep.mubr.msk.bf16.mxu0 %vm336_vm0, %v3720_v53  ;;  %2881 = vmatpush3.bf16.msra.mxu0 %v3220_v50 }
 0x387   : > { %2882 = vmatprep.subr.bf16.mxu0 %v3223_v51 }
 0x38a   : > { %2883 = vmatpush3.bf16.msra.mxu0 %v3224_v54 }
 0x38b   : > { %2884 = vmatprep.subr.bf16.mxu0 %v3227_v55 }
 0x38d   : > { %3045 = vmatmul.mubr.msk.bf16.gmra.mxu0 %vm336_vm0, %v3737_v58 }
 0x38e   : > { %2885 = vmatpush3.bf16.msra.mxu0 %v3228_v56 }
 0x38f   : > { %2886 = vmatprep.subr.bf16.mxu0 %v3231_v57 }
 0x392   : > { %2887 = vmatpush3.bf16.msra.mxu0 %v3232_v59 }
 0x393   : > { %2888 = vmatprep.subr.bf16.mxu0 %v3235_v62 }
 0x396   : > { %2889 = vmatpush3.bf16.msra.mxu0 %v3236_v63 }
 0x397   : > { %2890 = vmatprep.subr.bf16.mxu0 %v3239_v2  ;;  %v3253_v2 = vld [vmem:[%s4009_s2 + $0x438] sm:$0xff]  }
 0x39a   : > { %2891 = vmatpush3.bf16.msra.mxu0 %v3240_v3  ;;  %v3254_v3 = vld [vmem:[%s4009_s2 + $0x3f8] sm:$0xff]  }
 0x39b   : > { %2892 = vmatprep.subr.bf16.mxu0 %v3241_v4  ;;  %v3255_v4 = vld [vmem:[%s4009_s2 + $0x430] sm:$0xff]  }
 0x39e   : > { %2893 = vmatpush3.bf16.msra.mxu0 %v3243_v5  ;;  %v3256_v5 = vld [vmem:[%s4009_s2 + $0x3f0] sm:$0xff]  }
 0x39f   : > { %2894 = vmatprep.subr.bf16.mxu0 %v3244_v6  ;;  %v3257_v6 = vld [vmem:[%s4009_s2 + $0x428] sm:$0xff]  }
 0x3a2   : > { %2895 = vmatpush3.bf16.msra.mxu0 %v3246_v9  ;;  %v3258_v9 = vld [vmem:[%s4009_s2 + $0x3e8] sm:$0xff]  }
 0x445   : > { %v3042_v10 = vpop.f32.mrf.mxu0 }
 0x447   : > { %v1423_v13 = vpop.f32.mrf.mxu0 }
 0x449   : > { %v3043_v14 = vpop.f32.mrf.mxu0 }
 0x44a   : > { %v1455_v25 = vpack.c.bf16 %v3043_v14, %v3042_v10  ;;  %v3265_v10 = vld [vmem:[%s4009_s2 + $0x418] sm:$0xff]   ;;  %v3270_v14 = vld [vmem:[%s4009_s2 + $0x3d0] sm:$0xff]  }
 0x44b   : > { %v1426_v15 = vpop.f32.mrf.mxu0 }
 0x44c   : > { %v1454_v16 = vpack.c.bf16 %v1426_v15, %v1423_v13  ;;  %v3266_v13 = vld [vmem:[%s4009_s2 + $0x3d8] sm:$0xff]   ;;  %v3273_v15 = vld [vmem:[%s4009_s2 + $0x408] sm:$0xff]  }
 0x44d   : > { %v3046_v18 = vpop.f32.mrf.mxu0 }
 0x44e   : > { %1734 = vmatprep.mubr.bf16.mxu1 %v1454_v16  ;;  %v3274_v16 = vld [vmem:[%s4009_s2 + $0x3c8] sm:$0xff]  }
 0x44f   : > { %v1439_v19 = vpop.f32.mrf.mxu0  ;;  %1735 = vmatmul.mubr.bf16.vlgmr.msra.gmra.mxu1 %v1307_v48 }
 0x450   : > { %3049 = vmatpush3.bf16.msra.mxu1 %v3242_v17  ;;  %3064 = vmatprep.mubr.msk.bf16.mxu1 %vm3314_vm1, %v3313_v34  ;;  %v3275_v17 = vld [vmem:[%s4009_s2 + $0x498] sm:$0xff]  }
 0x451   : > { %v3047_v21 = vpop.f32.mrf.mxu0  ;;  %3050 = vmatprep.subr.bf16.mxu1 %v3313_v34 }
 0x452   : > { %v1457_v30 = vpack.c.bf16 %v3047_v21, %v3046_v18  ;;  %v3276_v18 = vld [vmem:[%s4009_s2 + $0x458] sm:$0xff]   ;;  %v3279_v21 = vld [vmem:[%s4009_s2 + $0x490] sm:$0xff]  }
 0x453   : > { %v1442_v22 = vpop.f32.mrf.mxu0 }
 0x454   : > { %v1456_v23 = vpack.c.bf16 %v1442_v22, %v1439_v19  ;;  %3051 = vmatpush3.bf16.msra.mxu1 %v3245_v20  ;;  %v3277_v19 = vld [vmem:[%s4009_s2 + $0x400] sm:$0xff]   ;;  %v3280_v22 = vld [vmem:[%s4009_s2 + $0x450] sm:$0xff]  }
 0x455   : > { %3052 = vmatprep.subr.bf16.mxu1 %v3313_v34  ;;  %v3278_v20 = vld [vmem:[%s4009_s2 + $0x3c0] sm:$0xff]  }
 0x456   : > { %1775 = vmatprep.mubr.bf16.mxu0 %v1456_v23  ;;  %v3281_v23 = vld [vmem:[%s4009_s2 + $0x488] sm:$0xff]  }
 0x457   : > { %1776 = vmatmul.mubr.bf16.vlgmr.msra.gmra.mxu0 %v1455_v25  ;;  %v3284_v25 = vld [vmem:[%s4009_s2 + $0x480] sm:$0xff]  }
 0x458   : > { %3053 = vmatpush3.bf16.msra.mxu1 %v3247_v24  ;;  %3070 = vmatprep.mubr.msk.bf16.mxu0 %vm336_vm0, %v3662_v11  ;;  %v3251_v11 = vld [vmem:[%s4009_s2 + $0x388] sm:$0xff]  }
 0x459   : > { %3054 = vmatprep.subr.bf16.mxu1 %v3313_v34  ;;  %v3283_v24 = vld [vmem:[%s4009_s2 + $0x448] sm:$0xff]  }
 0x45c   : > { %3055 = vmatpush3.bf16.msra.mxu1 %v3248_v26  ;;  %v3286_v26 = vld [vmem:[%s4009_s2 + $0x440] sm:$0xff]  }
 0x45d   : > { %3056 = vmatprep.subr.bf16.mxu1 %v3313_v34 }
 0x460   : > { %3057 = vmatpush3.bf16.msra.mxu1 %v3249_v27 }
 0x461   : > { %3058 = vmatprep.subr.bf16.mxu1 %v3313_v34 }
 0x464   : > { %3059 = vmatpush3.bf16.msra.mxu1 %v3250_v28 }
 0x465   : > { %3060 = vmatprep.subr.bf16.mxu1 %v3313_v34 }
 0x468   : > { %3061 = vmatpush3.bf16.msra.mxu1 %v3251_v11 }
 0x469   : > { %3062 = vmatprep.subr.bf16.mxu1 %v3313_v34 }
 0x46c   : > { %3063 = vmatpush3.bf16.msra.mxu1 %v3252_v29 }
 0x46d   : > { %2938 = vmatprep.subr.bf16.mxu1 %v3259_v31  ;;  %v3282_v31 = vld [vmem:[%s4009_s2 + $0x4f8] sm:$0xff]  }
 0x46f   : > { %3065 = vmatmul.mubr.bf16.vlgmr.msra.gmra.mxu1 %v1457_v30 }
 0x470   : > { %2939 = vmatpush3.bf16.msra.mxu1 %v3260_v32 }
 0x471   : > { %2940 = vmatprep.subr.bf16.mxu1 %v3263_v33 }
 0x474   : > { %2941 = vmatpush3.bf16.msra.mxu1 %v3264_v35  ;;  %v3285_v35 = vld [vmem:[%s4009_s2 + $0x4f0] sm:$0xff]  }
 0x475   : > { %2942 = vmatprep.subr.bf16.mxu1 %v3267_v36 }
 0x478   : > { %2943 = vmatpush3.bf16.msra.mxu1 %v3268_v37 }
 0x479   : > { %2944 = vmatprep.subr.bf16.mxu1 %v3271_v7 }
 0x47c   : > { %2945 = vmatpush3.bf16.msra.mxu1 %v3272_v8  ;;  %v3287_v8 = vld [vmem:[%s4009_s2 + $0x4e8] sm:$0xff]  }
 0x47d   : > { %2946 = vmatprep.subr.bf16.mxu1 %v3275_v17  ;;  %v2723_v17 = vld [vmem:[%s4010_s3 + $0x4] ss:$0 sm:$0xff] }
 0x480   : > { %2947 = vmatpush3.bf16.msra.mxu1 %v3276_v18 }
 0x481   : > { %2948 = vmatprep.subr.bf16.mxu1 %v3279_v21 }
 0x484   : > { %2949 = vmatpush3.bf16.msra.mxu1 %v3280_v22 }
 0x485   : > { %2950 = vmatprep.subr.bf16.mxu1 %v3281_v23 }
 0x488   : > { %2951 = vmatpush3.bf16.msra.mxu1 %v3283_v24 }
 0x489   : > { %2952 = vmatprep.subr.bf16.mxu1 %v3284_v25 }
 0x48c   : > { %2953 = vmatpush3.bf16.msra.mxu1 %v3286_v26 }
 0x48d   : > { %3098 = vmatprep.subr.bf16.mxu1 %v3313_v34 }
 0x50f   : > { %v2874_v38 = vpop.f32.mrf.mxu1 }
 0x511   : > { %v2875_v12 = vpop.f32.mrf.mxu1 }
 0x512   : > { %v2876_v44 = vadd.f32 %v2875_v12, %v2874_v38  ;;  %v3289_v12 = vld [vmem:[%s4009_s2 + $0x4d8] sm:$0xff]  }
 0x513   : > { %v2877_v41 = vpop.f32.mrf.mxu1 }
 0x514   : > { %v1737_v49 = vadd.f32 %v2876_v44, %v2637_v45  ;;  %v3293_v44 = vld [vmem:[%s4009_s2 + $0x538] sm:$0xff]  }
 0x515   : > { %v2878_v43 = vpop.f32.mrf.mxu1 }
 0x516   : > { %v2879_v47 = vadd.f32 %v2878_v43, %v2877_v41  ;;  %v3291_v41 = vld [vmem:[%s4009_s2 + $0x4c8] sm:$0xff]  }
 0x517   : > { %v2896_v39 = vpop.f32.mrf.mxu0 }
 0x518   : > { %v1740_v54 = vadd.f32 %v2879_v47, %v2637_v45  ;;  %v3294_v45 = vld [vmem:[%s4009_s2 + $0x530] sm:$0xff]   ;;  %v3296_v47 = vld [vmem:[%s4009_s2 + $0x520] sm:$0xff]  }
 0x519   : > { %v2897_v40 = vpop.f32.mrf.mxu0 }
 0x51a   : > { %v2898_v48 = vadd.f32 %v2897_v40, %v2896_v39  ;;  %v3288_v39 = vld [vmem:[%s4009_s2 + $0x4e0] sm:$0xff]   ;;  %v3290_v40 = vld [vmem:[%s4009_s2 + $0x4d0] sm:$0xff]  }
 0x51b   : > { %v2899_v42 = vpop.f32.mrf.mxu0 }
 0x51c   : > { %v1778_v55 = vadd.f32 %v2898_v48, %v1737_v49  ;;  %v3297_v48 = vld [vmem:[%s4009_s2 + $0x518] sm:$0xff]   ;;  %v3298_v49 = vld [vmem:[%s4009_s2 + $0x510] sm:$0xff]  }
 0x51d   : > { %v2900_v46 = vpop.f32.mrf.mxu0 }
 0x51e   : > { %v2901_v50 = vadd.f32 %v2900_v46, %v2899_v42  ;;  %v3292_v42 = vld [vmem:[%s4009_s2 + $0x4c0] sm:$0xff]   ;;  %v3295_v46 = vld [vmem:[%s4009_s2 + $0x528] sm:$0xff]  }
 0x520   : > { %v1781_v59 = vadd.f32 %v2901_v50, %v1740_v54  ;;  %v3299_v50 = vld [vmem:[%s4009_s2 + $0x508] sm:$0xff]  }
 0x52f   : > { %v1818_v51 = vpop.f32.mrf.mxu1 }
 0x530   : > { %v1819_v57 = vadd.f32 %v1818_v51, %v1778_v55  ;;  %v3300_v51 = vld [vmem:[%s4009_s2 + $0x500] sm:$0xff]  }
 0x531   : > { %v3066_v56 = vpop.f32.mrf.mxu1 }
 0x532   : > { %v1825_v63 = vmax.f32 %v1819_v57, 0.0 }
 0x533   : > { %v1821_v60 = vpop.f32.mrf.mxu1 }
 0x534   : > { %v1822_v61 = vadd.f32 %v1821_v60, %v1781_v59 }
 0x535   : > { %v3067_v62 = vpop.f32.mrf.mxu1 }
 0x536   : > { %v1826_v0 = vmax.f32 %v1822_v61, 0.0 }
 0x538   : > { %v3843_v1 = vpack.c.bf16 %v1826_v0, %v1825_v63  ;;  %v2682_v63 = vld [vmem:[%s4010_s3 + $0x3] ss:$0 sm:$0xff] }
 0x53a   : > { %3068 = vmatprep.subr.bf16.mxu0 %v3843_v1 }
 0x53b   : > { %3069 = vmatpush3.bf16.msra.mxu0 %v3843_v1 }
 0x53c   : > { %2916 = vmatprep.subr.bf16.mxu0 %v3253_v2 }
 0x53e   : > { %3071 = vmatmul.mubr.msk.bf16.vlgmr.msra.gmra.mxu0 %vm336_vm0, %v3715_v52  ;;  %v3261_v52 = vld [vmem:[%s4009_s2 + $0x420] sm:$0xff]  }
 0x53f   : > { %3074 = vmatprep.mubr.msk.bf16.mxu0 %vm336_vm0, %v3720_v53  ;;  %2917 = vmatpush3.bf16.msra.mxu0 %v3254_v3  ;;  %v3262_v53 = vld [vmem:[%s4009_s2 + $0x3e0] sm:$0xff]  }
 0x540   : > { %2918 = vmatprep.subr.bf16.mxu0 %v3255_v4 }
 0x543   : > { %2919 = vmatpush3.bf16.msra.mxu0 %v3256_v5 }
 0x544   : > { %2920 = vmatprep.subr.bf16.mxu0 %v3257_v6 }
 0x546   : > { %3075 = vmatmul.mubr.msk.bf16.gmra.mxu0 %vm336_vm0, %v3737_v58  ;;  %v3269_v58 = vld [vmem:[%s4009_s2 + $0x410] sm:$0xff]  }
 0x547   : > { %2921 = vmatpush3.bf16.msra.mxu0 %v3258_v9 }
 0x548   : > { %2922 = vmatprep.subr.bf16.mxu0 %v3261_v52 }
 0x54b   : > { %2923 = vmatpush3.bf16.msra.mxu0 %v3262_v53 }
 0x54c   : > { %2924 = vmatprep.subr.bf16.mxu0 %v3265_v10 }
 0x54f   : > { %2925 = vmatpush3.bf16.msra.mxu0 %v3266_v13 }
 0x550   : > { %2926 = vmatprep.subr.bf16.mxu0 %v3269_v58 }
 0x553   : > { %2927 = vmatpush3.bf16.msra.mxu0 %v3270_v14 }
 0x554   : > { %2928 = vmatprep.subr.bf16.mxu0 %v3273_v15 }
 0x557   : > { %2929 = vmatpush3.bf16.msra.mxu0 %v3274_v16 }
 0x558   : > { %2930 = vmatprep.subr.bf16.mxu0 %v3277_v19 }
 0x55b   : > { %2931 = vmatpush3.bf16.msra.mxu0 %v3278_v20 }
 0x55c   : > { %3078 = vmatprep.subr.bf16.mxu0 %v3313_v34 }
 0x5fe   : > { %v3072_v27 = vpop.f32.mrf.mxu0 }
 0x600   : > { %v1943_v28 = vpop.f32.mrf.mxu0 }
 0x602   : > { %v3073_v11 = vpop.f32.mrf.mxu0 }
 0x603   : > { %v1975_v38 = vpack.c.bf16 %v3073_v11, %v3072_v27 }
 0x604   : > { %v1946_v29 = vpop.f32.mrf.mxu0 }
 0x605   : > { %v1974_v30 = vpack.c.bf16 %v1946_v29, %v1943_v28 }
 0x606   : > { %v3076_v32 = vpop.f32.mrf.mxu0 }
 0x607   : > { %2254 = vmatprep.mubr.bf16.mxu0 %v1974_v30 }
 0x608   : > { %v1959_v33 = vpop.f32.mrf.mxu0  ;;  %2255 = vmatmul.mubr.bf16.vlgmr.msra.gmra.mxu0 %v3843_v1 }
 0x609   : > { %3079 = vmatpush3.bf16.msra.mxu0 %v3282_v31  ;;  %3094 = vmatprep.mubr.msk.bf16.mxu0 %vm3314_vm1, %v3313_v34 }
 0x60a   : > { %v3077_v36 = vpop.f32.mrf.mxu0  ;;  %3080 = vmatprep.subr.bf16.mxu0 %v3313_v34 }
 0x60b   : > { %v1977_v43 = vpack.c.bf16 %v3077_v36, %v3076_v32 }
 0x60c   : > { %v1962_v37 = vpop.f32.mrf.mxu0 }
 0x60d   : > { %v1976_v7 = vpack.c.bf16 %v1962_v37, %v1959_v33  ;;  %3081 = vmatpush3.bf16.msra.mxu0 %v3285_v35 }
 0x60e   : > { %3082 = vmatprep.subr.bf16.mxu0 %v3313_v34 }
 0x60f   : > { %2295 = vmatprep.mubr.bf16.mxu1 %v1976_v7 }
 0x610   : > { %2296 = vmatmul.mubr.bf16.vlgmr.msra.gmra.mxu1 %v1975_v38 }
 0x611   : > { %3083 = vmatpush3.bf16.msra.mxu0 %v3287_v8  ;;  %3114 = vmatprep.mubr.msk.bf16.mxu1 %vm3314_vm1, %v3313_v34 }
 0x612   : > { %3084 = vmatprep.subr.bf16.mxu0 %v3313_v34  ;;  %3099 = vmatpush3.bf16.msra.mxu1 %v3293_v44 }
 0x613   : > { %3100 = vmatprep.subr.bf16.mxu1 %v3313_v34 }
 0x615   : > { %3085 = vmatpush3.bf16.msra.mxu0 %v3288_v39 }
 0x616   : > { %3086 = vmatprep.subr.bf16.mxu0 %v3313_v34  ;;  %3101 = vmatpush3.bf16.msra.mxu1 %v3294_v45 }
 0x617   : > { %3102 = vmatprep.subr.bf16.mxu1 %v3313_v34 }
 0x619   : > { %3087 = vmatpush3.bf16.msra.mxu0 %v3289_v12 }
 0x61a   : > { %3088 = vmatprep.subr.bf16.mxu0 %v3313_v34  ;;  %3103 = vmatpush3.bf16.msra.mxu1 %v3295_v46 }
 0x61b   : > { %3104 = vmatprep.subr.bf16.mxu1 %v3313_v34 }
 0x61d   : > { %3089 = vmatpush3.bf16.msra.mxu0 %v3290_v40 }
 0x61e   : > { %3090 = vmatprep.subr.bf16.mxu0 %v3313_v34  ;;  %3105 = vmatpush3.bf16.msra.mxu1 %v3296_v47 }
 0x61f   : > { %3106 = vmatprep.subr.bf16.mxu1 %v3313_v34 }
 0x621   : > { %3091 = vmatpush3.bf16.msra.mxu0 %v3291_v41 }
 0x622   : > { %3092 = vmatprep.subr.bf16.mxu0 %v3313_v34  ;;  %3107 = vmatpush3.bf16.msra.mxu1 %v3297_v48 }
 0x623   : > { %3108 = vmatprep.subr.bf16.mxu1 %v3313_v34 }
 0x625   : > { %3093 = vmatpush3.bf16.msra.mxu0 %v3292_v42 }
 0x626   : > { %3109 = vmatpush3.bf16.msra.mxu1 %v3298_v49 }
 0x627   : > { %3110 = vmatprep.subr.bf16.mxu1 %v3313_v34 }
 0x628   : > { %3095 = vmatmul.mubr.bf16.vlgmr.msra.gmra.mxu0 %v1977_v43 }
 0x62a   : > { %3111 = vmatpush3.bf16.msra.mxu1 %v3299_v50 }
 0x62b   : > { %3112 = vmatprep.subr.bf16.mxu1 %v3313_v34 }
 0x62e   : > { %3113 = vmatpush3.bf16.msra.mxu1 %v3300_v51 }
 0x6c8   : > { %v2932_v54 = vpop.f32.mrf.mxu0 }
 0x6ca   : > { %v2933_v56 = vpop.f32.mrf.mxu0 }
 0x6cb   : > { %v2934_v62 = vadd.f32 %v2933_v56, %v2932_v54 }
 0x6cc   : > { %v2935_v59 = vpop.f32.mrf.mxu0 }
 0x6cd   : > { %v2257_v2 = vadd.f32 %v2934_v62, %v2682_v63 }
 0x6ce   : > { %v2936_v61 = vpop.f32.mrf.mxu0 }
 0x6cf   : > { %v2937_v1 = vadd.f32 %v2936_v61, %v2935_v59 }
 0x6d0   : > { %v2954_v55 = vpop.f32.mrf.mxu1 }
 0x6d1   : > { %v2260_v5 = vadd.f32 %v2937_v1, %v2682_v63 }
 0x6d2   : > { %v2955_v57 = vpop.f32.mrf.mxu1 }
 0x6d3   : > { %v2956_v34 = vadd.f32 %v2955_v57, %v2954_v55 }
 0x6d4   : > { %v2957_v60 = vpop.f32.mrf.mxu1 }
 0x6d5   : > { %v2298_v6 = vadd.f32 %v2956_v34, %v2257_v2 }
 0x6d6   : > { %v2958_v0 = vpop.f32.mrf.mxu1 }
 0x6d7   : > { %v2959_v3 = vadd.f32 %v2958_v0, %v2957_v60 }
 0x6d9   : > { %v2301_v53 = vadd.f32 %v2959_v3, %v2260_v5 }
 0x6e8   : > { %v2338_v4 = vpop.f32.mrf.mxu0 }
 0x6e9   : > { %v2339_v52 = vadd.f32 %v2338_v4, %v2298_v6 }
 0x6ea   : > { %v3096_v9 = vpop.f32.mrf.mxu0 }
 0x6eb   : > { %v2345_v14 = vmax.f32 %v2339_v52, 0.0 }
 0x6ec   : > { %v2341_v10 = vpop.f32.mrf.mxu0 }
 0x6ed   : > { %v2342_v13 = vadd.f32 %v2341_v10, %v2301_v53 }
 0x6ee   : > { %v3097_v58 = vpop.f32.mrf.mxu0 }
 0x6ef   : > { %v2346_v15 = vmax.f32 %v2342_v13, 0.0 }
 0x6f1   : > { %v2347_v16 = vpack.c.bf16 %v2346_v15, %v2345_v14 }
 0x6f3   : > { %3115 = vmatmul.mubr.bf16.vlgmr.msra.gmra.mxu1 %v2347_v16 }
 0x7b3   : > { %v2451_v18 = vpop.f32.mrf.mxu1 }
 0x7b4   : > { %v2452_v19 = vadd.f32 %v2723_v17, %v2451_v18 }
 0x7b5   : > { %v3116_v20 = vpop.f32.mrf.mxu1 }
 0x7b6   : > { %2458 = vst [vmem:[%s217_s22] sm:$0xff] %v2452_v19 }
 0x7b7   : > { %v2454_v21 = vpop.f32.mrf.mxu1 }
 0x7b8   : > { %v2455_v22 = vadd.f32 %v2723_v17, %v2454_v21 }
 0x7b9   : > { %v3117_v23 = vpop.f32.mrf.mxu1 }
 0x7ba   : > { %2459 = vst [vmem:[%s217_s22 + $0x8] sm:$0xff] %v2455_v22 }
 0x7bb PF: > { %s14_s15 = sadd.s32 1, %s3311_s15  }
 0x7bc   : > { %p11_p4 = scmp.ge.s32.totalorder %s14_s15, 6  }
 0x7be   :  { %13 = sbr.rel (!%p11_p4) target bundleno = 1 (0x1), region = 69 }

</bundles_post_ra>
